<compile_context>
chip_gen: v7x
topology: tpu7x:2x2x1
jax: 0.10.0
libtpu: 0.0.40
codegen_flags: <defaults>
</compile_context>

<pallas_src>
import math
from functools import partial

import jax
import jax.numpy as jnp
from jax import lax
from jax.experimental import pallas as pl
from jax.experimental.pallas import tpu as pltpu


def _leaky_relu(x, slope=0.1):
    return jnp.where(x > 0, x, slope * x)


# ---------------------------------------------------------------------------
# Kernel body.  All tensors are channel-major: (channels, length_tile).
# ---------------------------------------------------------------------------
def kernel_predictor_kernel(
    xc_ref,      # (Cc, tileL)    current length tile of the conditioning seq
    xh_ref,      # (Cc, 128)      halo: 128 cols starting at the next tile
    w_in_ref,    # (5, H, Cc)     input conv weight, one (H, Cc) slab per tap
    b_in_ref,    # (H, 1)         f32
    w_r1_ref,    # (H, H)
    b_r1_ref,    # (H, 1)         f32
    w_r2_ref,    # (H, H)
    b_r2_ref,    # (H, 1)         f32
    w_k_ref,     # (Kch, H+1)     kernel head weight | bias column
    w_b_ref,     # (Bch, H+1)     bias head weight | bias column
    k_out_ref,   # (Kch, tileL)   output block (NCL)
    b_out_ref,   # (Bch, tileL)   output block (NCL)
):
    n_tap = w_in_ref.shape[0]                 # == 5
    tile_l = xc_ref.shape[-1]
    mm_dtype = w_r1_ref.dtype                 # bf16 (or f32) matmul operand dtype

    # tileL + 128 column window (only the first tileL + 4 columns are used).
    x_all = jnp.concatenate([xc_ref[...], xh_ref[...]], axis=-1).astype(mm_dtype)

    # input_conv: Conv1d(Cc -> H, kernel=5, pad=0) as 5 accumulating matmuls
    # of depth Cc (no materialized im2col slab).
    acc = jnp.dot(w_in_ref[0], x_all[:, 0:tile_l],
                  preferred_element_type=jnp.float32)
    for k in range(1, n_tap):
        acc = acc + jnp.dot(w_in_ref[k], x_all[:, k:k + tile_l],
                            preferred_element_type=jnp.float32)
    y = _leaky_relu(acc + b_in_ref[...])                      # f32, LeakyReLU(0.1)

    # residual_conv: Dropout(0) -> Conv1d(H,H,1) -> LeakyReLU -> Conv1d(H,H,1)
    h = jnp.dot(w_r1_ref[...], y.astype(mm_dtype),
                preferred_element_type=jnp.float32) + b_r1_ref[...]
    h = _leaky_relu(h)
    h = jnp.dot(w_r2_ref[...], h.astype(mm_dtype),
                preferred_element_type=jnp.float32) + b_r2_ref[...]
    c = y + h                                                 # f32 residual add

    # Heads: bias folded into the contraction via a ones row; each head stores
    # straight into its output ref (no fused intermediate, no sublane split).
    c_aug = jnp.concatenate(
        [c.astype(mm_dtype), jnp.ones((1, tile_l), dtype=mm_dtype)], axis=0)
    k_out_ref[...] = jnp.dot(w_k_ref[...], c_aug,
                             preferred_element_type=jnp.float32
                             ).astype(k_out_ref.dtype)
    b_out_ref[...] = jnp.dot(w_b_ref[...], c_aug,
                             preferred_element_type=jnp.float32
                             ).astype(b_out_ref.dtype)


def _choose_tile(lout, cc, hid, kch, bch, in_bytes, cdt_bytes, out_bytes,
                 budget_bytes, max_tile):
    """Largest multiple of 128 <= max_tile whose per-step VMEM estimate
    (double-buffered inputs/outputs + weights + intermediates) fits the budget."""
    need = 128 * pl.cdiv(lout, 128)
    max_tile = max(128, min((max_tile // 128) * 128, need))
    # Weights counted double-buffered (conservative: they are grid-constant).
    w_bytes = (2 * cdt_bytes * (5 * hid * cc + 2 * hid * hid
                                + (kch + bch) * (hid + 1)) + 2 * 4 * 3 * hid)
    for tl in range(max_tile, 127, -128):
        io = (2 * in_bytes * cc * (tl + 128)            # x tile + halo, 2 buffers
              + 2 * out_bytes * (kch + bch) * tl)       # output blocks, 2 buffers
        scratch = 4 * (7 * cc + 6 * hid) * tl           # in-kernel intermediates
        if w_bytes + io + scratch <= budget_bytes:
            return tl
    return 128


# ---------------------------------------------------------------------------
# Wrapper: takes PyTorch-layout (NCL) input and torch-layout conv weights.
# ---------------------------------------------------------------------------
@partial(jax.jit, static_argnames=("conv_layers", "conv_in_channels",
                                   "conv_out_channels", "conv_kernel_size",
                                   "compute_dtype", "out_dtype",
                                   "vmem_budget_mb", "max_tile_l"))
def kernel_predictor(c, params, *, conv_layers, conv_in_channels,
                     conv_out_channels, conv_kernel_size,
                     compute_dtype=jnp.bfloat16, out_dtype=jnp.float32,
                     vmem_budget_mb=28, max_tile_l=1024):
    """c: (batch, cond_channels, cond_length)  -- PyTorch NCL layout.

    vmem_budget_mb: ~28 is safe on all generations (v7x has 64 MiB/TC);
    v5e/v6e (128 MiB) can pass ~96 and max_tile_l=1024 for peak HBM roofline.
    out_dtype=jnp.bfloat16 halves output writeback when the consumer allows it.
    """
    B, Cc, L = c.shape
    H, _, KT = params["w_in"].shape                    # KT == 5
    Lout = L - (KT - 1)
    Kch = params["w_k"].shape[0]
    Bch = params["w_b"].shape[0]

    cdt = compute_dtype
    in_b = jnp.dtype(c.dtype).itemsize
    cdt_b = jnp.dtype(cdt).itemsize
    out_b = jnp.dtype(out_dtype).itemsize

    tileL = _choose_tile(Lout, Cc, H, Kch, Bch, in_b, cdt_b, out_b,
                         vmem_budget_mb * 1024 * 1024, max_tile_l)
    nT = pl.cdiv(Lout, tileL)
    hb = tileL // 128
    last_hblk = pl.cdiv(L, 128) - 1                    # clamp target for the halo

    # Weight repacking (tiny, done once per call under jit).
    w_in = jnp.transpose(params["w_in"], (2, 0, 1)).astype(cdt)        # (5, H, Cc)
    b_in = params["b_in"].reshape(H, 1).astype(jnp.float32)
    w_r1 = params["w_r1"][:, :, 0].astype(cdt)
    b_r1 = params["b_r1"].reshape(H, 1).astype(jnp.float32)
    w_r2 = params["w_r2"][:, :, 0].astype(cdt)
    b_r2 = params["b_r2"].reshape(H, 1).astype(jnp.float32)
    w_k = jnp.concatenate([params["w_k"][:, :, 0],
                           params["b_k"].reshape(Kch, 1)], axis=1).astype(cdt)
    w_b = jnp.concatenate([params["w_b"][:, :, 0],
                           params["b_b"].reshape(Bch, 1)], axis=1).astype(cdt)

    # Put the larger extent first so v7x's 2 TensorCores both get work.
    seq_major = nT >= B
    grid = (nT, B) if seq_major else (B, nT)

    def _bt(i, j):
        return (j, i) if seq_major else (i, j)

    def xcur_map(i, j):
        b, t = _bt(i, j)
        return (b, 0, t)

    def xhalo_map(i, j):
        b, t = _bt(i, j)
        # First 128 columns of the next tile; clamped to the last valid block
        # (the clamped case only fires when the halo is not actually needed).
        return (b, 0, jnp.minimum((t + 1) * hb, last_hblk))

    def wmap(i, j):
        return (0, 0)

    def wmap3(i, j):
        return (0, 0, 0)

    def out_map(i, j):
        b, t = _bt(i, j)
        return (b, 0, t)

    k_out, b_out = pl.pallas_call(
        kernel_predictor_kernel,
        out_shape=(jax.ShapeDtypeStruct((B, Kch, Lout), out_dtype),
                   jax.ShapeDtypeStruct((B, Bch, Lout), out_dtype)),
        grid_spec=pltpu.PrefetchScalarGridSpec(
            num_scalar_prefetch=0,
            grid=grid,
            in_specs=[
                pl.BlockSpec((None, Cc, tileL), xcur_map),
                pl.BlockSpec((None, Cc, 128), xhalo_map),
                pl.BlockSpec((KT, H, Cc), wmap3),
                pl.BlockSpec((H, 1), wmap),
                pl.BlockSpec((H, H), wmap),
                pl.BlockSpec((H, 1), wmap),
                pl.BlockSpec((H, H), wmap),
                pl.BlockSpec((H, 1), wmap),
                pl.BlockSpec((Kch, H + 1), wmap),
                pl.BlockSpec((Bch, H + 1), wmap),
            ],
            out_specs=[
                pl.BlockSpec((None, Kch, tileL), out_map),
                pl.BlockSpec((None, Bch, tileL), out_map),
            ],
        ),
        compiler_params=pltpu.CompilerParams(
            dimension_semantics=("parallel", "parallel"),
            vmem_limit_bytes=int(min(max(vmem_budget_mb * 1.25, 32), 100)
                                 * 1024 * 1024),
        ),
    )(c, c, w_in, b_in, w_r1, b_r1, w_r2, b_r2, w_k, w_b)

    # Pure-view reshapes (axis-1 split of contiguous NCL data), matching
    # PyTorch's .view(B, layers, cin, cout, ksize, Lout) / (B, layers, cout, Lout).
    kernels = k_out.reshape(B, conv_layers, conv_in_channels, conv_out_channels,
                            conv_kernel_size, Lout)
    bias = b_out.reshape(B, conv_layers, conv_out_channels, Lout)
    return kernels, bias


# ---------------------------------------------------------------------------
# Pure-JAX reference of the PyTorch forward (torch weight layout: (O, I, K)).
# ---------------------------------------------------------------------------
def _conv1d_ncl(x, w_oik, b):
    y = lax.conv_general_dilated(x, w_oik, window_strides=(1,), padding="VALID",
                                 dimension_numbers=("NCH", "OIH", "NCH"))
    return y + b[None, :, None]


def kernel_predictor_ref(c, params, *, conv_layers, conv_in_channels,
                         conv_out_channels, conv_kernel_size):
    B, _, L = c.shape
    Lout = L - 4
    y = _leaky_relu(_conv1d_ncl(c, params["w_in"], params["b_in"]))
    h = _leaky_relu(_conv1d_ncl(y, params["w_r1"], params["b_r1"]))
    h = _conv1d_ncl(h, params["w_r2"], params["b_r2"])
    cc = y + h
    k = _conv1d_ncl(cc, params["w_k"], params["b_k"])
    b = _conv1d_ncl(cc, params["w_b"], params["b_b"])
    kernels = k.reshape(B, conv_layers, conv_in_channels, conv_out_channels,
                        conv_kernel_size, Lout)
    bias = b.reshape(B, conv_layers, conv_out_channels, Lout)
    return kernels, bias


def _init_params(key, cond_channels, hidden, kernel_channels, bias_channels):
    keys = jax.random.split(key, 10)

    def u(k, shape, fan_in):
        bound = 1.0 / math.sqrt(fan_in)
        return jax.random.uniform(k, shape, jnp.float32, -bound, bound)

    return {
        "w_in": u(keys[0], (hidden, cond_channels, 5), cond_channels * 5),
        "b_in": u(keys[1], (hidden,), cond_channels * 5),
        "w_r1": u(keys[2], (hidden, hidden, 1), hidden),
        "b_r1": u(keys[3], (hidden,), hidden),
        "w_r2": u(keys[4], (hidden, hidden, 1), hidden),
        "b_r2": u(keys[5], (hidden,), hidden),
        "w_k": u(keys[6], (kernel_channels, hidden, 1), hidden),
        "b_k": u(keys[7], (kernel_channels,), hidden),
        "w_b": u(keys[8], (bias_channels, hidden, 1), hidden),
        "b_b": u(keys[9], (bias_channels,), hidden),
    }


if __name__ == "__main__":
    # Small, forward-consistent config.
    batch = 2
    cond_channels = 8
    cond_length = 24              # -> Lout = 20
    kpnet_hidden_channels = 32
    conv_in_channels = 4
    conv_out_channels = 4
    conv_kernel_size = 3
    conv_layers = 2
    kernel_channels = conv_in_channels * conv_out_channels * conv_kernel_size * conv_layers
    bias_channels = conv_out_channels * conv_layers

    key = jax.random.PRNGKey(0)
    k_c, k_p = jax.random.split(key)
    c = jax.random.normal(k_c, (batch, cond_channels, cond_length), jnp.float32)
    params = _init_params(k_p, cond_channels, kpnet_hidden_channels,
                          kernel_channels, bias_channels)

    cfg = dict(conv_layers=conv_layers, conv_in_channels=conv_in_channels,
               conv_out_channels=conv_out_channels,
               conv_kernel_size=conv_kernel_size)

    # Reference (pure JAX, f32).
    kernels_ref, bias_ref = kernel_predictor_ref(c, params, **cfg)

    # Optimized bf16-MXU path (f32 accumulation, f32 outputs).
    kernels, bias = kernel_predictor(c, params, compute_dtype=jnp.bfloat16, **cfg)
    jax.block_until_ready((kernels, bias))
    assert kernels.shape == (batch, conv_layers, conv_in_channels,
                             conv_out_channels, conv_kernel_size, cond_length - 4)
    assert bias.shape == (batch, conv_layers, conv_out_channels, cond_length - 4)
    assert jnp.allclose(kernels, kernels_ref, rtol=5e-2, atol=5e-2)
    assert jnp.allclose(bias, bias_ref, rtol=5e-2, atol=5e-2)

    # f32 path for a tight numerical check of the kernel structure.
    kernels32, bias32 = kernel_predictor(c, params, compute_dtype=jnp.float32, **cfg)
    jax.block_until_ready((kernels32, bias32))
    assert jnp.allclose(kernels32, kernels_ref, rtol=1e-4, atol=1e-4)
    assert jnp.allclose(bias32, bias_ref, rtol=1e-4, atol=1e-4)

    # bf16-output path (halved writeback traffic); looser tolerance.
    kernels16, bias16 = kernel_predictor(c, params, compute_dtype=jnp.bfloat16,
                                         out_dtype=jnp.bfloat16, **cfg)
    jax.block_until_ready((kernels16, bias16))
    assert jnp.allclose(kernels16.astype(jnp.float32), kernels_ref, rtol=1e-1, atol=1e-1)
    assert jnp.allclose(bias16.astype(jnp.float32), bias_ref, rtol=1e-1, atol=1e-1)

    print("KERNEL_OK")
</pallas_src>

<mosaic_0001>
module attributes {stable_mosaic.version = 11 : i64} {
  func.func @kernel_predictor_kernel(%arg0: i32, %arg1: i32, %arg2: memref<1x8x128xf32, #tpu.memory_space<vmem>>, %arg3: memref<1x8x128xf32, #tpu.memory_space<vmem>>, %arg4: memref<5x32x8xbf16, #tpu.memory_space<vmem>>, %arg5: memref<32x1xf32, #tpu.memory_space<vmem>>, %arg6: memref<32x32xbf16, #tpu.memory_space<vmem>>, %arg7: memref<32x1xf32, #tpu.memory_space<vmem>>, %arg8: memref<32x32xbf16, #tpu.memory_space<vmem>>, %arg9: memref<32x1xf32, #tpu.memory_space<vmem>>, %arg10: memref<96x33xbf16, #tpu.memory_space<vmem>>, %arg11: memref<8x33xbf16, #tpu.memory_space<vmem>>, %arg12: memref<1x96x128xf32, #tpu.memory_space<vmem>>, %arg13: memref<1x8x128xf32, #tpu.memory_space<vmem>>) attributes {dimension_semantics = [#tpu.dimension_semantics<parallel>, #tpu.dimension_semantics<parallel>], iteration_bounds = array<i64: 2, 1>, scalar_prefetch = 0 : i64, scratch_operands = 0 : i64, tpu.core_type = #tpu.core_type<tc>, window_params = [{transform_indices = @transform_0, window_bounds = array<i64: 1, 8, 128>}, {transform_indices = @transform_1, window_bounds = array<i64: 1, 8, 128>}, {pipeline_mode = #tpu.pipeline_mode<synchronous>, transform_indices = @transform_2, window_bounds = array<i64: 5, 32, 8>}, {pipeline_mode = #tpu.pipeline_mode<synchronous>, transform_indices = @transform_3, window_bounds = array<i64: 32, 1>}, {pipeline_mode = #tpu.pipeline_mode<synchronous>, transform_indices = @transform_4, window_bounds = array<i64: 32, 32>}, {pipeline_mode = #tpu.pipeline_mode<synchronous>, transform_indices = @transform_5, window_bounds = array<i64: 32, 1>}, {pipeline_mode = #tpu.pipeline_mode<synchronous>, transform_indices = @transform_6, window_bounds = array<i64: 32, 32>}, {pipeline_mode = #tpu.pipeline_mode<synchronous>, transform_indices = @transform_7, window_bounds = array<i64: 32, 1>}, {pipeline_mode = #tpu.pipeline_mode<synchronous>, transform_indices = @transform_8, window_bounds = array<i64: 96, 33>}, {pipeline_mode = #tpu.pipeline_mode<synchronous>, transform_indices = @transform_9, window_bounds = array<i64: 8, 33>}, {transform_indices = @transform_10, window_bounds = array<i64: 1, 96, 128>}, {transform_indices = @transform_11, window_bounds = array<i64: 1, 8, 128>}]} {
    %c0 = arith.constant 0 : index
    %c0_0 = arith.constant 0 : index
    %c0_1 = arith.constant 0 : index
    %0 = vector.load %arg2[%c0, %c0_0, %c0_1] : memref<1x8x128xf32, #tpu.memory_space<vmem>>, vector<1x8x128xf32>
    %1 = vector.shape_cast %0 : vector<1x8x128xf32> to vector<8x128xf32>
    %c0_2 = arith.constant 0 : index
    %c0_3 = arith.constant 0 : index
    %c0_4 = arith.constant 0 : index
    %2 = vector.load %arg3[%c0_2, %c0_3, %c0_4] : memref<1x8x128xf32, #tpu.memory_space<vmem>>, vector<1x8x128xf32>
    %3 = vector.shape_cast %2 : vector<1x8x128xf32> to vector<8x128xf32>
    %4 = tpu.concatenate %1, %3 in 1 : vector<8x128xf32>, vector<8x128xf32> -> vector<8x256xf32>
    %5 = arith.truncf %4 : vector<8x256xf32> to vector<8x256xbf16>
    %c0_5 = arith.constant 0 : index
    %c0_6 = arith.constant 0 : index
    %c0_7 = arith.constant 0 : index
    %6 = vector.load %arg4[%c0_5, %c0_6, %c0_7] : memref<5x32x8xbf16, #tpu.memory_space<vmem>>, vector<1x32x8xbf16>
    %7 = vector.shape_cast %6 : vector<1x32x8xbf16> to vector<32x8xbf16>
    %8 = vector.extract_strided_slice %5 {offsets = [0, 0], sizes = [8, 128], strides = [1, 1]} : vector<8x256xbf16> to vector<8x128xbf16>
    %cst = arith.constant dense<0.000000e+00> : vector<32x128xf32>
    %9 = tpu.matmul %7, %8, %cst {dimension_numbers = #tpu.dot_dimension_numbers<[1], [0], [0], [1], [0, 0, 1, 1], [], []>} : vector<32x8xbf16>, vector<8x128xbf16>, vector<32x128xf32> -> vector<32x128xf32>
    %c1 = arith.constant 1 : index
    %c0_8 = arith.constant 0 : index
    %c0_9 = arith.constant 0 : index
    %10 = vector.load %arg4[%c1, %c0_8, %c0_9] : memref<5x32x8xbf16, #tpu.memory_space<vmem>>, vector<1x32x8xbf16>
    %11 = vector.shape_cast %10 : vector<1x32x8xbf16> to vector<32x8xbf16>
    %12 = vector.extract_strided_slice %5 {offsets = [0, 1], sizes = [8, 128], strides = [1, 1]} : vector<8x256xbf16> to vector<8x128xbf16>
    %cst_10 = arith.constant dense<0.000000e+00> : vector<32x128xf32>
    %13 = tpu.matmul %11, %12, %cst_10 {dimension_numbers = #tpu.dot_dimension_numbers<[1], [0], [0], [1], [0, 0, 1, 1], [], []>} : vector<32x8xbf16>, vector<8x128xbf16>, vector<32x128xf32> -> vector<32x128xf32>
    %14 = arith.addf %9, %13 : vector<32x128xf32>
    %c2 = arith.constant 2 : index
    %c0_11 = arith.constant 0 : index
    %c0_12 = arith.constant 0 : index
    %15 = vector.load %arg4[%c2, %c0_11, %c0_12] : memref<5x32x8xbf16, #tpu.memory_space<vmem>>, vector<1x32x8xbf16>
    %16 = vector.shape_cast %15 : vector<1x32x8xbf16> to vector<32x8xbf16>
    %17 = vector.extract_strided_slice %5 {offsets = [0, 2], sizes = [8, 128], strides = [1, 1]} : vector<8x256xbf16> to vector<8x128xbf16>
    %cst_13 = arith.constant dense<0.000000e+00> : vector<32x128xf32>
    %18 = tpu.matmul %16, %17, %cst_13 {dimension_numbers = #tpu.dot_dimension_numbers<[1], [0], [0], [1], [0, 0, 1, 1], [], []>} : vector<32x8xbf16>, vector<8x128xbf16>, vector<32x128xf32> -> vector<32x128xf32>
    %19 = arith.addf %14, %18 : vector<32x128xf32>
    %c3 = arith.constant 3 : index
    %c0_14 = arith.constant 0 : index
    %c0_15 = arith.constant 0 : index
    %20 = vector.load %arg4[%c3, %c0_14, %c0_15] : memref<5x32x8xbf16, #tpu.memory_space<vmem>>, vector<1x32x8xbf16>
    %21 = vector.shape_cast %20 : vector<1x32x8xbf16> to vector<32x8xbf16>
    %22 = vector.extract_strided_slice %5 {offsets = [0, 3], sizes = [8, 128], strides = [1, 1]} : vector<8x256xbf16> to vector<8x128xbf16>
    %cst_16 = arith.constant dense<0.000000e+00> : vector<32x128xf32>
    %23 = tpu.matmul %21, %22, %cst_16 {dimension_numbers = #tpu.dot_dimension_numbers<[1], [0], [0], [1], [0, 0, 1, 1], [], []>} : vector<32x8xbf16>, vector<8x128xbf16>, vector<32x128xf32> -> vector<32x128xf32>
    %24 = arith.addf %19, %23 : vector<32x128xf32>
    %c4 = arith.constant 4 : index
    %c0_17 = arith.constant 0 : index
    %c0_18 = arith.constant 0 : index
    %25 = vector.load %arg4[%c4, %c0_17, %c0_18] : memref<5x32x8xbf16, #tpu.memory_space<vmem>>, vector<1x32x8xbf16>
    %26 = vector.shape_cast %25 : vector<1x32x8xbf16> to vector<32x8xbf16>
    %27 = vector.extract_strided_slice %5 {offsets = [0, 4], sizes = [8, 128], strides = [1, 1]} : vector<8x256xbf16> to vector<8x128xbf16>
    %cst_19 = arith.constant dense<0.000000e+00> : vector<32x128xf32>
    %28 = tpu.matmul %26, %27, %cst_19 {dimension_numbers = #tpu.dot_dimension_numbers<[1], [0], [0], [1], [0, 0, 1, 1], [], []>} : vector<32x8xbf16>, vector<8x128xbf16>, vector<32x128xf32> -> vector<32x128xf32>
    %29 = arith.addf %24, %28 : vector<32x128xf32>
    %c0_20 = arith.constant 0 : index
    %c0_21 = arith.constant 0 : index
    %30 = vector.load %arg5[%c0_20, %c0_21] : memref<32x1xf32, #tpu.memory_space<vmem>>, vector<32x1xf32>
    %31 = vector.broadcast %30 : vector<32x1xf32> to vector<32x128xf32>
    %32 = arith.addf %29, %31 : vector<32x128xf32>
    %cst_22 = arith.constant 0.000000e+00 : f32
    %33 = vector.broadcast %cst_22 : f32 to vector<32x128xf32>
    %34 = arith.cmpf ogt, %32, %33 : vector<32x128xf32>
    %cst_23 = arith.constant 1.000000e-01 : f32
    %35 = vector.broadcast %cst_23 : f32 to vector<32x128xf32>
    %36 = arith.mulf %35, %32 : vector<32x128xf32>
    %37 = arith.select %34, %32, %36 : vector<32x128xi1>, vector<32x128xf32>
    %c0_24 = arith.constant 0 : index
    %c0_25 = arith.constant 0 : index
    %38 = vector.load %arg6[%c0_24, %c0_25] : memref<32x32xbf16, #tpu.memory_space<vmem>>, vector<32x32xbf16>
    %39 = arith.truncf %37 : vector<32x128xf32> to vector<32x128xbf16>
    %cst_26 = arith.constant dense<0.000000e+00> : vector<32x128xf32>
    %40 = tpu.matmul %38, %39, %cst_26 {dimension_numbers = #tpu.dot_dimension_numbers<[1], [0], [0], [1], [0, 0, 1, 1], [], []>} : vector<32x32xbf16>, vector<32x128xbf16>, vector<32x128xf32> -> vector<32x128xf32>
    %c0_27 = arith.constant 0 : index
    %c0_28 = arith.constant 0 : index
    %41 = vector.load %arg7[%c0_27, %c0_28] : memref<32x1xf32, #tpu.memory_space<vmem>>, vector<32x1xf32>
    %42 = vector.broadcast %41 : vector<32x1xf32> to vector<32x128xf32>
    %43 = arith.addf %40, %42 : vector<32x128xf32>
    %cst_29 = arith.constant 0.000000e+00 : f32
    %44 = vector.broadcast %cst_29 : f32 to vector<32x128xf32>
    %45 = arith.cmpf ogt, %43, %44 : vector<32x128xf32>
    %cst_30 = arith.constant 1.000000e-01 : f32
    %46 = vector.broadcast %cst_30 : f32 to vector<32x128xf32>
    %47 = arith.mulf %46, %43 : vector<32x128xf32>
    %48 = arith.select %45, %43, %47 : vector<32x128xi1>, vector<32x128xf32>
    %c0_31 = arith.constant 0 : index
    %c0_32 = arith.constant 0 : index
    %49 = vector.load %arg8[%c0_31, %c0_32] : memref<32x32xbf16, #tpu.memory_space<vmem>>, vector<32x32xbf16>
    %50 = arith.truncf %48 : vector<32x128xf32> to vector<32x128xbf16>
    %cst_33 = arith.constant dense<0.000000e+00> : vector<32x128xf32>
    %51 = tpu.matmul %49, %50, %cst_33 {dimension_numbers = #tpu.dot_dimension_numbers<[1], [0], [0], [1], [0, 0, 1, 1], [], []>} : vector<32x32xbf16>, vector<32x128xbf16>, vector<32x128xf32> -> vector<32x128xf32>
    %c0_34 = arith.constant 0 : index
    %c0_35 = arith.constant 0 : index
    %52 = vector.load %arg9[%c0_34, %c0_35] : memref<32x1xf32, #tpu.memory_space<vmem>>, vector<32x1xf32>
    %53 = vector.broadcast %52 : vector<32x1xf32> to vector<32x128xf32>
    %54 = arith.addf %51, %53 : vector<32x128xf32>
    %55 = arith.addf %37, %54 : vector<32x128xf32>
    %56 = arith.truncf %55 : vector<32x128xf32> to vector<32x128xbf16>
    %cst_36 = arith.constant 1.000000e+00 : bf16
    %57 = vector.broadcast %cst_36 : bf16 to vector<1x128xbf16>
    %58 = tpu.concatenate %56, %57 in 0 : vector<32x128xbf16>, vector<1x128xbf16> -> vector<33x128xbf16>
    %c0_37 = arith.constant 0 : index
    %c0_38 = arith.constant 0 : index
    %59 = vector.load %arg10[%c0_37, %c0_38] : memref<96x33xbf16, #tpu.memory_space<vmem>>, vector<96x33xbf16>
    %cst_39 = arith.constant dense<0.000000e+00> : vector<96x128xf32>
    %60 = tpu.matmul %59, %58, %cst_39 {dimension_numbers = #tpu.dot_dimension_numbers<[1], [0], [0], [1], [0, 0, 1, 1], [], []>} : vector<96x33xbf16>, vector<33x128xbf16>, vector<96x128xf32> -> vector<96x128xf32>
    %c0_40 = arith.constant 0 : index
    %c0_41 = arith.constant 0 : index
    %c0_42 = arith.constant 0 : index
    %61 = vector.load %arg12[%c0_40, %c0_41, %c0_42] : memref<1x96x128xf32, #tpu.memory_space<vmem>>, vector<1x96x128xf32>
    %62 = vector.shape_cast %61 : vector<1x96x128xf32> to vector<96x128xf32>
    %63 = vector.shape_cast %60 : vector<96x128xf32> to vector<1x96x128xf32>
    tpu.vector_store %arg12[%c0_40, %c0_41, %c0_42], %63 {strides = array<i32>} : memref<1x96x128xf32, #tpu.memory_space<vmem>>, vector<1x96x128xf32>,
    %c0_43 = arith.constant 0 : index
    %c0_44 = arith.constant 0 : index
    %64 = vector.load %arg11[%c0_43, %c0_44] : memref<8x33xbf16, #tpu.memory_space<vmem>>, vector<8x33xbf16>
    %cst_45 = arith.constant dense<0.000000e+00> : vector<8x128xf32>
    %65 = tpu.matmul %64, %58, %cst_45 {dimension_numbers = #tpu.dot_dimension_numbers<[1], [0], [0], [1], [0, 0, 1, 1], [], []>} : vector<8x33xbf16>, vector<33x128xbf16>, vector<8x128xf32> -> vector<8x128xf32>
    %c0_46 = arith.constant 0 : index
    %c0_47 = arith.constant 0 : index
    %c0_48 = arith.constant 0 : index
    %66 = vector.load %arg13[%c0_46, %c0_47, %c0_48] : memref<1x8x128xf32, #tpu.memory_space<vmem>>, vector<1x8x128xf32>
    %67 = vector.shape_cast %66 : vector<1x8x128xf32> to vector<8x128xf32>
    %68 = vector.shape_cast %65 : vector<8x128xf32> to vector<1x8x128xf32>
    tpu.vector_store %arg13[%c0_46, %c0_47, %c0_48], %68 {strides = array<i32>} : memref<1x8x128xf32, #tpu.memory_space<vmem>>, vector<1x8x128xf32>,
    return
  }
  func.func @transform_0(%arg0: i32, %arg1: i32) -> (i32, i32, i32) {
    %c0_i32 = arith.constant 0 : i32
    %c0_i32_0 = arith.constant 0 : i32
    return %arg0, %c0_i32, %arg1 : i32, i32, i32
  }
  func.func @transform_1(%arg0: i32, %arg1: i32) -> (i32, i32, i32) {
    %c1_i32 = arith.constant 1 : i32
    %0 = arith.addi %arg1, %c1_i32 : i32
    %c1_i32_0 = arith.constant 1 : i32
    %1 = arith.muli %0, %c1_i32_0 : i32
    %c0_i32 = arith.constant 0 : i32
    %2 = arith.minsi %1, %c0_i32 : i32
    %c0_i32_1 = arith.constant 0 : i32
    %c0_i32_2 = arith.constant 0 : i32
    return %arg0, %c0_i32_1, %2 : i32, i32, i32
  }
  func.func @transform_2(%arg0: i32, %arg1: i32) -> (i32, i32, i32) {
    %c0_i32 = arith.constant 0 : i32
    %c0_i32_0 = arith.constant 0 : i32
    %c0_i32_1 = arith.constant 0 : i32
    %c0_i32_2 = arith.constant 0 : i32
    return %c0_i32, %c0_i32_0, %c0_i32_1 : i32, i32, i32
  }
  func.func @transform_3(%arg0: i32, %arg1: i32) -> (i32, i32) {
    %c0_i32 = arith.constant 0 : i32
    %c0_i32_0 = arith.constant 0 : i32
    %c0_i32_1 = arith.constant 0 : i32
    return %c0_i32, %c0_i32_0 : i32, i32
  }
  func.func @transform_4(%arg0: i32, %arg1: i32) -> (i32, i32) {
    %c0_i32 = arith.constant 0 : i32
    %c0_i32_0 = arith.constant 0 : i32
    %c0_i32_1 = arith.constant 0 : i32
    return %c0_i32, %c0_i32_0 : i32, i32
  }
  func.func @transform_5(%arg0: i32, %arg1: i32) -> (i32, i32) {
    %c0_i32 = arith.constant 0 : i32
    %c0_i32_0 = arith.constant 0 : i32
    %c0_i32_1 = arith.constant 0 : i32
    return %c0_i32, %c0_i32_0 : i32, i32
  }
  func.func @transform_6(%arg0: i32, %arg1: i32) -> (i32, i32) {
    %c0_i32 = arith.constant 0 : i32
    %c0_i32_0 = arith.constant 0 : i32
    %c0_i32_1 = arith.constant 0 : i32
    return %c0_i32, %c0_i32_0 : i32, i32
  }
  func.func @transform_7(%arg0: i32, %arg1: i32) -> (i32, i32) {
    %c0_i32 = arith.constant 0 : i32
    %c0_i32_0 = arith.constant 0 : i32
    %c0_i32_1 = arith.constant 0 : i32
    return %c0_i32, %c0_i32_0 : i32, i32
  }
  func.func @transform_8(%arg0: i32, %arg1: i32) -> (i32, i32) {
    %c0_i32 = arith.constant 0 : i32
    %c0_i32_0 = arith.constant 0 : i32
    %c0_i32_1 = arith.constant 0 : i32
    return %c0_i32, %c0_i32_0 : i32, i32
  }
  func.func @transform_9(%arg0: i32, %arg1: i32) -> (i32, i32) {
    %c0_i32 = arith.constant 0 : i32
    %c0_i32_0 = arith.constant 0 : i32
    %c0_i32_1 = arith.constant 0 : i32
    return %c0_i32, %c0_i32_0 : i32, i32
  }
  func.func @transform_10(%arg0: i32, %arg1: i32) -> (i32, i32, i32) {
    %c0_i32 = arith.constant 0 : i32
    %c0_i32_0 = arith.constant 0 : i32
    return %arg0, %c0_i32, %arg1 : i32, i32, i32
  }
  func.func @transform_11(%arg0: i32, %arg1: i32) -> (i32, i32, i32) {
    %c0_i32 = arith.constant 0 : i32
    %c0_i32_0 = arith.constant 0 : i32
    return %arg0, %c0_i32, %arg1 : i32, i32, i32
  }
}

</mosaic_0001>

<bundles_post_ra>
// kernel: kernel_predictor.1
= control target key start
LH: loop header
LB: loop body
LE: loop exit
PB: predicated region body
PF: predicated region fallthrough
CT: control target
= control target key end

     0   :  { %s2204_s0 = inlined_call_operand.vmem [shape: f32[2,8,24], index: 0, kind: input, shape index: {}, may-alias: {0,1}]   ;;  %s2205_s1 = inlined_call_operand.vmem [shape: f32[2,8,24], index: 1, kind: input, shape index: {}, may-alias: {0,1}]   ;;  %s2206_s2 = inlined_call_operand.vmem [shape: bf16[5,32,8], index: 2, kind: input, shape index: {}]   ;;  %s2207_s3 = inlined_call_operand.vmem [shape: f32[32,1], index: 3, kind: input, shape index: {}]   ;;  %s2208_s4 = inlined_call_operand.vmem [shape: bf16[32,32], index: 4, kind: input, shape index: {}]   ;;  %s2209_s5 = inlined_call_operand.vmem [shape: f32[32,1], index: 5, kind: input, shape index: {}]   ;;  %s2210_s6 = inlined_call_operand.vmem [shape: bf16[32,32], index: 6, kind: input, shape index: {}]   ;;  %s2211_s7 = inlined_call_operand.vmem [shape: f32[32,1], index: 7, kind: input, shape index: {}]   ;;  %s2212_s8 = inlined_call_operand.vmem [shape: bf16[96,33], index: 8, kind: input, shape index: {}]   ;;  %s2213_s9 = inlined_call_operand.vmem [shape: bf16[8,33], index: 9, kind: input, shape index: {}]   ;;  %s2214_s10 = inlined_call_operand.vmem [shape: f32[2,96,20], index: 10, kind: output, shape index: {0}]   ;;  %s2215_s11 = inlined_call_operand.hbm [shape: f32[2,8,20], index: 11, kind: output, shape index: {1}]  }
   0x1   :  { %2218 = sst [smem:[#allocation8_spill]] %s2204_s0 }
   0x2   :  { %17 = vsyncpa [#allocation3], 0 }
   0x3   :  { %19 = vsyncpa [#allocation3 + $0x1], 0  ;;  %s1923_s17 = smov 0   ;;  %s1925_s18 = smov 0  }
   0x4   :  { %s1927_s19 = smov 0   ;;  %s1929_s20 = smov 0  }
   0x5   :  { %s1931_s21 = smov 0   ;;  %s1933_s22 = smov 0  }
   0x6 LB: > { %2219 = sst [smem:[#allocation5_spill]] %s1849_s21  ;;  %s1489_s23 = sadd.s32 4294967295, %s1853_s22   ;;  %s1853_s22 = sphi %s1933_s22, %s25_s22   ;;  %s1849_s21 = sphi %s1931_s21, %s2227_s21   ;;  %s1845_s20 = sphi %s1929_s20, %s2226_s20   ;;  %s1841_s19 = sphi %s1927_s19, %s2230_s19   ;;  %s1837_s18 = sphi %s1925_s18, %s2229_s18   ;;  %s1833_s17 = sphi %s1923_s17, %s2228_s17  }
   0x7   : > { %s1490_s24 = sadd.s32 4294967294, %s1853_s22   ;;  %s37_s25 = sadd.s32 1, %s1849_s21 }
   0x8   : > { %s304_s26 = sadd.s32 1, %s1841_s19  ;;  %p39_p0 = scmp.ge.s32.totalorder %s37_s25, 2 }
   0x9   : > { %p314_p1 = scmp.ne.s32.totalorder %s1841_s19, %s1837_s18  ;;  %p315_p2 = scmp.eq.s32.totalorder %s1489_s23, 1 }
   0xa   : > { %p320_p3 = scmp.ne.s32.totalorder %s1837_s18, %s1833_s17  ;;  %s2232_s25 = smov (%p39_p0, %s37_s25), 0 }
   0xb   : > { %2220 = sst [smem:[#allocation6_spill]] %s2232_s25  ;;  %p1963_p4 = por %p315_p2, %p314_p1 }
   0xc   : > { %p321_p5 = scmp.eq.s32.totalorder %s1490_s24, 1  ;;  %s299_s28 = ssub.s32 %s1849_s21, %s2232_s25 }
   0xd   : > { %p1493_p6 = scmp.ge.s32.totalorder %s1853_s22, 1  ;;  %p302_p7 = scmp.eq.s32.totalorder %s299_s28, 0 }
   0xe   : > { %p1970_p8 = por %p321_p5, %p320_p3  ;;  %p389_p9 = scmp.lt.s32.totalorder %s1853_s22, 3 }
   0xf   : > { %s1976_s30 = scalar_select %p302_p7, %s1841_s19, %s304_s26  }
  0x10   : > { %p390_p10 = pnand %p1493_p6, %p389_p9 }
  0x11   : > { %2223 = sst [smem:[#allocation7_spill]] %s1976_s30  ;;  %p449_p11 = scmp.lt.s32.totalorder (!%p390_p10), %s1845_s20, 1  ;;  %v1755_v0 = vld [vmem:[%s2206_s2 + $0x10] sm:$0xff] (!%p390_p10)   ;;  %vm510_vm0 = vcmask (!%p390_p10), 64512   ;;  %v888_v5 = vld [vmem:[%s2207_s3 + $0x8] sm:$0xff] (!%p390_p10)  ;;  %v887_v6 = vld [vmem:[%s2207_s3] sm:$0xff] (!%p390_p10) }
  0x12   : > { %393 = sbr.rel (%p390_p10) target bundleno = 1133 (0x46d), region = 60  ;;  %1597 = vmatprep.mubr.msk.bf16.mxu0 (!%p390_p10), %vm510_vm0, %v1755_v0  ;;  %s2224_s0 = sld [smem:[#allocation8_spill]] (!%p390_p10)  ;;  %v1859_v7 = vmov (!%p390_p10), 0   ;;  %v889_v8 = vld [vmem:[%s2207_s3 + $0x10] sm:$0xff] (!%p390_p10)  ;;  %v890_v9 = vld [vmem:[%s2207_s3 + $0x18] sm:$0xff] (!%p390_p10)  ;;  %v933_v10 = vld [vmem:[%s2209_s5] sm:$0xff] (!%p390_p10) }
  0x13   : > { %s1855_s21 = smov (!%p390_p10), 127   ;;  %s1856_s13 = smov (!%p390_p10), 126   ;;  %1754 = vset.pattern.permute.xlu1 (!%p390_p10), %v1859_v7  ;;  %1753 = vset.pattern.permute.xlu0 (!%p390_p10), %v1859_v7  ;;  %v934_v11 = vld [vmem:[%s2209_s5 + $0x8] sm:$0xff] (!%p390_p10)  ;;  %v935_v12 = vld [vmem:[%s2209_s5 + $0x10] sm:$0xff] (!%p390_p10)  ;;  %v936_v13 = vld [vmem:[%s2209_s5 + $0x18] sm:$0xff] (!%p390_p10)  ;;  %vm508_vm1 = vcmask (!%p390_p10), 1039360  }
  0x14   : > { %s1857_s14 = smov (!%p390_p10), 125   ;;  %s1858_s30 = smov (!%p390_p10), 124   ;;  %v1041_v14 = vld [vmem:[%s2211_s7] sm:$0xff] (!%p390_p10)  ;;  %v1042_v15 = vld [vmem:[%s2211_s7 + $0x8] sm:$0xff] (!%p390_p10)  ;;  %v1043_v16 = vld [vmem:[%s2211_s7 + $0x10] sm:$0xff] (!%p390_p10)  ;;  %vm517_vm2 = vcmask (!%p390_p10), 1043456  }
  0x15   : > { %v1044_v17 = vld [vmem:[%s2211_s7 + $0x18] sm:$0xff] (!%p390_p10)  ;;  %vm657_vm3 = vcmask (!%p390_p10), 1031168   ;;  %v1757_v25 = vld [vmem:[%s2206_s2] sm:$0xff] (!%p390_p10)   ;;  %v1758_v28 = vld [vmem:[%s2206_s2 + $0x8] sm:$0xff] (!%p390_p10)   ;;  %vm740_vm4 = vcmask (!%p390_p10), 1022976   ;;  %vm823_vm5 = vcmask (!%p390_p10), 1014784  }
  0x16   : > { %v1756_v23 = vld [vmem:[%s2206_s2 + $0x18] sm:$0xff] (!%p390_p10)   ;;  %v1759_v31 = vld [vmem:[%s2206_s2 + $0x20] sm:$0xff] (!%p390_p10)   ;;  %v1760_v34 = vld [vmem:[%s2206_s2 + $0x28] sm:$0xff] (!%p390_p10)   ;;  %vm967_vm6 = vcmask (!%p390_p10), 261120   ;;  %vm1178_vm15 = vcmask (!%p390_p10), 269312  }
  0x17   : > { %v1761_v37 = vld [vmem:[%s2206_s2 + $0x30] sm:$0xff] (!%p390_p10)   ;;  %v1762_v40 = vld [vmem:[%s2206_s2 + $0x38] sm:$0xff] (!%p390_p10)   ;;  %v1763_v41 = vld [vmem:[%s2206_s2 + $0x40] sm:$0xff] (!%p390_p10)  }
  0x18   : > { %v1764_v43 = vld [vmem:[%s2206_s2 + $0x48] sm:$0xff] (!%p390_p10)   ;;  %v1765_v44 = vld [vmem:[%s2208_s4] sm:$0xff] (!%p390_p10)  }
  0x19   : > { %s1980_s12 = scalar_select %p449_p11, %s1845_s20, 1  ;;  %1629 = vmatprep.mubr.msk.bf16.mxu1 %vm967_vm6, %v1765_v44 }
  0x1b   : > { %s1495_s15 = sshll.u32 %s1980_s12, 3  ;;  %s1690_s16 = smul.u32 96, %s1980_s12 }
  0x1c   : > { %s455_s24 = scalar_lea.vmem %s2224_s0, %s1495_s15  ;;  %s465_s25 = scalar_lea.vmem %s2205_s1, %s1495_s15 }
  0x1d   : > { %v479_v1 = vld [vmem:[%s455_s24] sm:$0xff] }
  0x1e   : > { %v480_v2 = vld [vmem:[%s465_s25] sm:$0xff]  ;;  %v481_v3 = vpack.c.bf16 %v479_v1, %v479_v1  ;;  %s1556_s25 = sshll.u32 %s1845_s20, 7 }
  0x1f   : > { %v482_v4 = vpack.c.bf16 %v480_v2, %v480_v2  ;;  %s2147_s28 = scalar_lea.hbm %s2215_s11, %s1556_s25 }
  0x20   : > { %504 = vrot.lane.b32.xlu0 %v481_v3, %s1855_s21  ;;  %653 = vrot.lane.b32.xlu1 %v481_v3, %s1856_s13  ;;  %v587_v26 = vsel %vm517_vm2, %v481_v3, 0 }
  0x24   : > { %506 = vrot.lane.b32.xlu0 %v482_v4, %s1855_s21  ;;  %655 = vrot.lane.b32.xlu1 %v482_v4, %s1856_s13  ;;  %s446_s13 = sand.u32 1, %s1837_s18  }
  0x25   : > { %s1350_s20 = scalar_lea.sflag [#allocation3], %s446_s13 }
  0x28   : > { %738 = vrot.lane.b32.xlu1 %v482_v4, %s1857_s14  ;;  %736 = vrot.lane.b32.xlu0 %v481_v3, %s1857_s14  ;;  %s1494_s14 = sshll.u32 %s446_s13, 3 }
  0x29   : > { %s448_s23 = scalar_lea.vmem [#allocation2], %s1494_s14  ;;  %s1862_s14 = smov [#allocation2]  }
  0x2a   : > { %s1367_s15 = sshll.u32 %s448_s23, 4  ;;  %s1779_s0 = sshll.u32 %s1862_s14, 4  ;;  %s2142_s15 = int_to_ptr.vmem [resolvable:$true] %s1367_s15  ;;  %s1780_s0 = int_to_ptr.vmem [resolvable:$false] %s1779_s0 }
  0x2b   : > { %s1775_s12 = scalar_lea.vmem %s2142_s15, 128  ;;  %p1782_p1 = scmp.lt.s32.totalorder %s2142_s15, %s1780_s0 }
  0x2c   : > { %821 = vrot.lane.b32.xlu1 %v482_v4, %s1858_s30  ;;  %819 = vrot.lane.b32.xlu0 %v481_v3, %s1858_s30  ;;  %v1767_v4 = vld [vmem:[%s2210_s6] sm:$0xff]   ;;  %s2140_s30 = scalar_lea.vmem %s2214_s10, %s1690_s16  ;;  %p1776_p12 = scmp.ne.s32.totalorder %s2142_s15, %s1775_s12 }
  0x2d   : > { %s1781_s16 = scalar_lea.vmem %s1780_s0, 256 }
  0x2e   : > { %p1777_p13 = pnand %p1776_p12, %p1963_p4  ;;  %p1783_p2 = scmp.lt.s32.totalorder %s1781_s16, %s1775_s12 }
  0x30   : > { %898 = vperm.xlu1 %1754, %v888_v5   ;;  %893 = vperm.xlu0 %1753, %v887_v6   ;;  %p1778_p0 = pneg %p1777_p13  ;;  %p1784_p3 = por %p1783_p2, %p1782_p1 }
  0x32   : > { %p1785_p5 = pnand %p1784_p3, %p1778_p0 }
  0x34   : > { %903 = vperm.xlu1 %1754, %v889_v8   ;;  %908 = vperm.xlu0 %1753, %v890_v9  }
  0x38   : > { %939 = vperm.xlu1 %1754, %v933_v10   ;;  %944 = vperm.xlu0 %1753, %v934_v11  }
  0x3c   : > { %949 = vperm.xlu1 %1754, %v935_v12   ;;  %954 = vperm.xlu0 %1753, %v936_v13  }
  0x40   : > { %1047 = vperm.xlu1 %1754, %v1041_v14   ;;  %1052 = vperm.xlu0 %1753, %v1042_v15  }
  0x44   : > { %1057 = vperm.xlu1 %1754, %v1043_v16   ;;  %1062 = vperm.xlu0 %1753, %v1044_v17  }
  0x92   : > { %v505_v18 = vpop.permute.xlu0 %504  ;;  %v654_v19 = vpop.permute.xlu1 %653 }
  0x96   : > { %v507_v20 = vpop.permute.xlu0 %506  ;;  %v656_v24 = vpop.permute.xlu1 %655 }
  0x97   : > { %v509_v21 = vsel %vm508_vm1, %v505_v18, %v507_v20  ;;  %v658_v27 = vsel %vm657_vm3, %v654_v19, %v656_v24  ;;  %vm1197_vm1 = vcmask 1040384  }
  0x98   : > { %1685 = vmatprep.subr.msk.bf16.mxu0 %vm517_vm2, %v509_v21  ;;  %v519_v22 = vsel %vm517_vm2, %v509_v21, 0  ;;  %v666_v32 = vsel %vm517_vm2, %v658_v27, 0 }
  0x99   : > { %1596 = vmatpush3.bf16.msra.mxu0 %v519_v22 }
  0x9a   : > { %1686 = vmatprep.subr.msk.bf16.mxu0 %vm517_vm2, %v481_v3  ;;  %v739_v29 = vpop.permute.xlu1 %738  ;;  %v737_v30 = vpop.permute.xlu0 %736  ;;  %v1766_v3 = vld [vmem:[%s2208_s4 + $0x8] sm:$0xff]  }
  0x9b   : > { %v741_v33 = vsel %vm740_vm4, %v737_v30, %v739_v29  ;;  %v1860_v29 = vmov 0.0   ;;  %v1769_v30 = vld [vmem:[%s2212_s8] sm:$0xff]  }
  0x9c   : > { %1598 = vmatmul.mubr.msk.bf16.vlgmr.msra.gmra.mrb[0].mxu0 %vm510_vm0, %v1756_v23  ;;  %v749_v38 = vsel %vm517_vm2, %v741_v33, 0 }
  0x9d   : > { %1602 = vmatpush3.bf16.msra.mxu0 %v587_v26  ;;  %1603 = vmatprep.mubr.msk.bf16.mxu0 %vm510_vm0, %v1757_v25 }
  0x9e   : > { %1687 = vmatprep.subr.msk.bf16.mxu0 %vm517_vm2, %v658_v27  ;;  %v822_v35 = vpop.permute.xlu1 %821  ;;  %v820_v36 = vpop.permute.xlu0 %819 }
  0x9f   : > { %v824_v39 = vsel %vm823_vm5, %v820_v36, %v822_v35 }
  0xa0   : > { %v832_v42 = vsel %vm517_vm2, %v824_v39, 0 }
  0xa8   : > { %1604 = vmatmul.mubr.msk.bf16.vlgmr.msra.gmra.mrb[0].mxu0 %vm510_vm0, %v1758_v28  ;;  %v1768_v28 = vld [vmem:[%s2210_s6 + $0x8] sm:$0xff]  }
  0xa9   : > { %1608 = vmatpush3.bf16.msra.mxu0 %v666_v32  ;;  %1609 = vmatprep.mubr.msk.bf16.mxu0 %vm510_vm0, %v1759_v31 }
  0xaa   : > { %1688 = vmatprep.subr.msk.bf16.mxu0 %vm517_vm2, %v741_v33 }
  0xaf   : > { %v899_v45 = vpop.permute.xlu1 %898  ;;  %v894_v46 = vpop.permute.xlu0 %893 }
  0xb3   : > { %v904_v48 = vpop.permute.xlu1 %903  ;;  %v909_v50 = vpop.permute.xlu0 %908 }
  0xb4   : > { %1610 = vmatmul.mubr.msk.bf16.vlgmr.msra.gmra.mrb[0].mxu0 %vm510_vm0, %v1760_v34 }
  0xb5   : > { %1614 = vmatpush3.bf16.msra.mxu0 %v749_v38  ;;  %1615 = vmatprep.mubr.msk.bf16.mxu0 %vm510_vm0, %v1761_v37 }
  0xb6   : > { %1689 = vmatprep.subr.msk.bf16.mxu0 %vm517_vm2, %v824_v39 }
  0xb7   : > { %v940_v5 = vpop.permute.xlu1 %939  ;;  %v945_v6 = vpop.permute.xlu0 %944 }
  0xbb   : > { %v950_v8 = vpop.permute.xlu1 %949  ;;  %v955_v12 = vpop.permute.xlu0 %954 }
  0xbf   : > { %v1048_v31 = vpop.permute.xlu1 %1047  ;;  %v1053_v32 = vpop.permute.xlu0 %1052 }
  0xc0   : > { %1616 = vmatmul.mubr.msk.bf16.vlgmr.msra.gmra.mrb[0].mxu0 %vm510_vm0, %v1762_v40 }
  0xc1   : > { %1620 = vmatpush3.bf16.msra.mxu0 %v832_v42  ;;  %1621 = vmatprep.mubr.msk.bf16.mxu0 %vm510_vm0, %v1763_v41 }
  0xc2   : > { %1659 = vmatprep.subr.bf16.mxu0 %v1860_v29 }
  0xc3   : > { %v1058_v33 = vpop.permute.xlu1 %1057  ;;  %v1063_v37 = vpop.permute.xlu0 %1062 }
  0xcc   : > { %1622 = vmatmul.mubr.msk.bf16.vlgmr.msra.gmra.mrb[0].mxu0 %vm510_vm0, %v1764_v43  ;;  %vm1861_vm0 = vmmov 0  }
  0xcd   : > { %1665 = vmatprep.mubr.msk.bf16.mxu0 %vm1861_vm0, %v1860_v29 }
 0x19f   : > { %v1623_v47 = vpop.f32.mrb[0].mxu0 }
 0x1a0   : > { %v868_v49 = vpop.f32.mrb[1].mxu0  ;;  %v913_v51 = vadd.f32 %v1623_v47, %v904_v48 }
 0x1a1   : > { %v911_v52 = vadd.f32 %v894_v46, %v868_v49  ;;  %v1624_v53 = vpop.f32.mrb[2].mxu0  ;;  %v1199_v49 = vsel %vm1197_vm1, 65535, %v1859_v7  ;;  %v1296_v7 = vld [vmem:[%s2213_s9] sm:$0xf] }
 0x1a2   : > { %v914_v54 = vadd.f32 %v1624_v53, %v909_v50  ;;  %v871_v55 = vpop.f32.mrb[3].mxu0  ;;  %v921_v59 = vmul.f32 0.1, %v913_v51  ;;  %vm917_vm10 = vcmp.gt.f32.partialorder %v913_v51, 0.0  ;;  %v1201_v50 = vand.u32 1065369472, %v1199_v49 }
 0x1a3   : > { %v919_v56 = vmul.f32 0.1, %v911_v52  ;;  %v912_v57 = vadd.f32 %v899_v45, %v871_v55  ;;  %vm915_vm8 = vcmp.gt.f32.partialorder %v911_v52, 0.0  ;;  %v1772_v53 = vld [vmem:[%s2212_s8 + $0x18] sm:$0xff]   ;;  %v1774_v55 = vld [vmem:[%s2212_s8 + $0x28] sm:$0xff]  }
 0x1a4   : > { %vm918_vm7 = vcmp.gt.f32.partialorder %v914_v54, 0.0  ;;  %v922_v58 = vmul.f32 0.1, %v914_v54  ;;  %v925_v1 = vsel %vm917_vm10, %v913_v51, %v921_v59  ;;  %v1770_v51 = vld [vmem:[%s2212_s8 + $0x8] sm:$0xff]  }
 0x1a5   : > { %v920_v60 = vmul.f32 0.1, %v912_v57  ;;  %vm916_vm9 = vcmp.gt.f32.partialorder %v912_v57, 0.0  ;;  %v2081_v61 = vsel %vm915_vm8, %v911_v52, %v919_v56  ;;  %v1771_v52 = vld [vmem:[%s2212_s8 + $0x10] sm:$0xff]  }
 0x1a6   : > { %v2085_v63 = vsel %vm918_vm7, %v914_v54, %v922_v58  ;;  %v1773_v54 = vld [vmem:[%s2212_s8 + $0x20] sm:$0xff]  }
 0x1a7   : > { %v2083_v62 = vsel %vm916_vm9, %v912_v57, %v920_v60  ;;  %v932_v2 = vpack.c.bf16 %v2085_v63, %v925_v1 }
 0x1a8   : > { %v931_v0 = vpack.c.bf16 %v2083_v62, %v2081_v61 }
 0x1aa   : > { %1625 = vmatprep.subr.bf16.mxu1 %v931_v0 }
 0x1ab   : > { %1626 = vmatpush3.bf16.msra.mxu1 %v931_v0 }
 0x1ac   : > { %1627 = vmatprep.subr.bf16.mxu1 %v932_v2 }
 0x1af   : > { %1628 = vmatpush3.bf16.msra.mxu1 %v932_v2 }
 0x1b2   : > { %1630 = vmatmul.mubr.msk.bf16.vlgmr.msra.gmra.mrb[0].mxu1 %vm967_vm6, %v1766_v3 }
 0x1b3   : > { %1637 = vmatprep.mubr.msk.bf16.mxu1 %vm967_vm6, %v1767_v4 }
 0x285   : > { %v1631_v9 = vpop.f32.mrb[0].mxu1 }
 0x286   : > { %v1017_v10 = vadd.f32 %v1631_v9, %v950_v8  ;;  %v1008_v11 = vpop.f32.mrb[1].mxu1 }
 0x287   : > { %v1009_v13 = vadd.f32 %v1008_v11, %v940_v5  ;;  %v1632_v14 = vpop.f32.mrb[2].mxu1 }
 0x288   : > { %v1029_v15 = vmul.f32 0.1, %v1017_v10  ;;  %v1020_v16 = vadd.f32 %v1632_v14, %v955_v12  ;;  %v1011_v17 = vpop.f32.mrb[3].mxu1  ;;  %vm1025_vm11 = vcmp.gt.f32.partialorder %v1017_v10, 0.0 }
 0x289   : > { %v1027_v18 = vmul.f32 0.1, %v1009_v13  ;;  %v1012_v19 = vadd.f32 %v1011_v17, %v945_v6  ;;  %vm1023_vm12 = vcmp.gt.f32.partialorder %v1009_v13, 0.0 }
 0x28a   : > { %vm1026_vm13 = vcmp.gt.f32.partialorder %v1020_v16, 0.0  ;;  %v1030_v20 = vmul.f32 0.1, %v1020_v16  ;;  %v1033_v22 = vsel %vm1025_vm11, %v1017_v10, %v1029_v15 }
 0x28b   : > { %vm1024_vm14 = vcmp.gt.f32.partialorder %v1012_v19, 0.0  ;;  %v1028_v21 = vmul.f32 0.1, %v1012_v19  ;;  %v1031_v24 = vsel %vm1023_vm12, %v1009_v13, %v1027_v18 }
 0x28c   : > { %v1034_v23 = vsel %vm1026_vm13, %v1020_v16, %v1030_v20 }
 0x28d   : > { %v1032_v25 = vsel %vm1024_vm14, %v1012_v19, %v1028_v21  ;;  %v1040_v26 = vpack.c.bf16 %v1034_v23, %v1033_v22 }
 0x28e   : > { %v1039_v27 = vpack.c.bf16 %v1032_v25, %v1031_v24 }
 0x290   : > { %1633 = vmatprep.subr.bf16.mxu1 %v1039_v27 }
 0x291   : > { %1634 = vmatpush3.bf16.msra.mxu1 %v1039_v27 }
 0x292   : > { %1635 = vmatprep.subr.bf16.mxu1 %v1040_v26 }
 0x295   : > { %1636 = vmatpush3.bf16.msra.mxu1 %v1040_v26 }
 0x298   : > { %1638 = vmatmul.mubr.msk.bf16.vlgmr.msra.gmra.mrb[4].mxu1 %vm967_vm6, %v1768_v28 }
 0x299   : > { %1647 = vmatprep.mubr.msk.bf16.mxu1 %vm1178_vm15, %v1769_v30 }
 0x36b   : > { %v1639_v34 = vpop.f32.mrb[4].mxu1 }
 0x36c   : > { %v1124_v35 = vadd.f32 %v1639_v34, %v1058_v33  ;;  %v1115_v36 = vpop.f32.mrb[5].mxu1 }
 0x36d   : > { %v1116_v38 = vadd.f32 %v1115_v36, %v1048_v31  ;;  %v1640_v39 = vpop.f32.mrb[6].mxu1 }
 0x36e   : > { %v1127_v40 = vadd.f32 %v1640_v39, %v1063_v37  ;;  %v1118_v41 = vpop.f32.mrb[7].mxu1  ;;  %v1132_v43 = vadd.f32 %v1124_v35, %v925_v1 }
 0x36f   : > { %v1119_v42 = vadd.f32 %v1118_v41, %v1053_v32  ;;  %v1130_v45 = vadd.f32 %v1116_v38, %v2081_v61 }
 0x370   : > { %v1133_v44 = vadd.f32 %v1127_v40, %v2085_v63 }
 0x371   : > { %v1131_v46 = vadd.f32 %v1119_v42, %v2083_v62 }
 0x372   : > { %v1135_v47 = vpack.c.bf16 %v1133_v44, %v1132_v43 }
 0x373   : > { %v1134_v48 = vpack.c.bf16 %v1131_v46, %v1130_v45 }
 0x375   : > { %1641 = vmatprep.subr.bf16.mxu1 %v1134_v48  ;;  %1660 = vmatpush3.bf16.msra.mxu0 %v1134_v48 }
 0x376   : > { %1642 = vmatpush3.bf16.msra.mxu1 %v1134_v48  ;;  %1661 = vmatprep.subr.bf16.mxu0 %v1860_v29 }
 0x377   : > { %1643 = vmatprep.subr.bf16.mxu1 %v1135_v47 }
 0x379   : > { %1662 = vmatpush3.bf16.msra.mxu0 %v1135_v47 }
 0x37a   : > { %1644 = vmatpush3.bf16.msra.mxu1 %v1135_v47  ;;  %1663 = vmatprep.subr.bf16.mxu0 %v1860_v29 }
 0x37b   : > { %1645 = vmatprep.subr.bf16.mxu1 %v1201_v50 }
 0x37d   : > { %1664 = vmatpush3.bf16.msra.mxu0 %v1201_v50 }
 0x37e   : > { %1646 = vmatpush3.bf16.msra.mxu1 %v1201_v50 }
 0x380   : > { %1666 = vmatmul.mubr.msk.bf16.vlgmr.msra.gmra.mrb[4].mxu0 %vm1178_vm15, %v1296_v7 }
 0x381   : > { %1648 = vmatmul.mubr.msk.bf16.vlgmr.msra.gmra.mrb[8].mxu1 %vm1178_vm15, %v1770_v51 }
 0x382   : > { %1651 = vmatprep.mubr.msk.bf16.mxu1 %vm1178_vm15, %v1771_v52 }
 0x389   : > { %1652 = vmatmul.mubr.msk.bf16.gmra.mrb[12].mxu1 %vm1178_vm15, %v1772_v53 }
 0x38a   : > { %1655 = vmatprep.mubr.msk.bf16.mxu1 %vm1178_vm15, %v1773_v54 }
 0x391   : > { %1656 = vmatmul.mubr.msk.bf16.gmra.mrb[16].mxu1 %vm1178_vm15, %v1774_v55 }
 0x453   : > { %v1334_v56 = vpop.f32.mrb[4].mxu0 }
 0x454   : > { %v1649_v57 = vpop.f32.mrb[8].mxu1  ;;  %1340 = vst [vmem:[%s448_s23] sm:$0xff] %v1334_v56  ;;  %v1667_v58 = vpop.f32.mrb[5].mxu0 }
 0x455   : > { %1286 = vst [vmem:[%s2140_s30 + $0x10] sm:$0xff] %v1649_v57  ;;  %v1237_v59 = vpop.f32.mrb[9].mxu1  ;;  %v1337_v60 = vpop.f32.mrb[6].mxu0 }
 0x456   : > { %1788 = shalt.err (!%p1785_p5)
}
 0x457   : > { %s1789_s13 = scalar_lea.hbm %s2147_s28, 128  ;;  %s1793_s21 = scalar_lea.hbm %s2215_s11, 256 }
 0x458   : > { %p1790_p6 = scmp.ne.s32.totalorder %s2147_s28, %s1789_s13  ;;  %p1794_p10 = scmp.lt.u32.totalorder %s2147_s28, %s2215_s11 }
 0x459   : > { %p1795_p11 = scmp.lt.u32.totalorder %s1793_s21, %s1789_s13  ;;  %p1797_p13 = scmp.lt.u32.totalorder %s1789_s13, %s2147_s28 }
 0x45a   : > { %p1791_p7 = pnand %p1790_p6, %p1963_p4 }
 0x45b   : > { %p1796_p12 = por %p1795_p11, %p1794_p10 }
 0x45c   : > { %p1792_p9 = pneg %p1791_p7 }
 0x45d   : > { %p1798_p0 = por %p1797_p13, %p1796_p12 }
 0x45f   : > { %p1799_p1 = pnand %p1798_p0, %p1792_p9 }
 0x461   : > { %1802 = shalt.err (!%p1799_p1)
}
 0x462   : > { %1691 = dma.vmem_to_hbm [thread:$0]  (%p1963_p4), %s2142_s15, 128, %s2147_s28, %s1350_s20   ;;  %1284 = vst [vmem:[%s2140_s30] sm:$0xff] %v1237_v59  ;;  %v1650_v61 = vpop.f32.mrb[10].mxu1  ;;  %v1668_v62 = vpop.f32.mrb[7].mxu0 }
 0x463   : > { %1287 = vst [vmem:[%s2140_s30 + $0x18] sm:$0xff] %v1650_v61  ;;  %v1240_v63 = vpop.f32.mrb[11].mxu1 }
 0x464   : > { %1285 = vst [vmem:[%s2140_s30 + $0x8] sm:$0xff] %v1240_v63  ;;  %v1653_v0 = vpop.f32.mrb[12].mxu1 }
 0x465   : > { %1290 = vst [vmem:[%s2140_s30 + $0x30] sm:$0xff] %v1653_v0  ;;  %v1253_v1 = vpop.f32.mrb[13].mxu1 }
 0x466   : > { %1288 = vst [vmem:[%s2140_s30 + $0x20] sm:$0xff] %v1253_v1  ;;  %v1654_v2 = vpop.f32.mrb[14].mxu1 }
 0x467   : > { %1291 = vst [vmem:[%s2140_s30 + $0x38] sm:$0xff] %v1654_v2  ;;  %v1256_v3 = vpop.f32.mrb[15].mxu1 }
 0x468   : > { %1289 = vst [vmem:[%s2140_s30 + $0x28] sm:$0xff] %v1256_v3  ;;  %v1657_v4 = vpop.f32.mrb[16].mxu1 }
 0x469   : > { %1294 = vst [vmem:[%s2140_s30 + $0x50] sm:$0xff] %v1657_v4  ;;  %v1269_v5 = vpop.f32.mrb[17].mxu1 }
 0x46a   : > { %1292 = vst [vmem:[%s2140_s30 + $0x40] sm:$0xff] %v1269_v5  ;;  %v1658_v6 = vpop.f32.mrb[18].mxu1 }
 0x46b   : > { %1295 = vst [vmem:[%s2140_s30 + $0x58] sm:$0xff] %v1658_v6  ;;  %v1272_v8 = vpop.f32.mrb[19].mxu1 }
 0x46c   : > { %1293 = vst [vmem:[%s2140_s30 + $0x48] sm:$0xff] %v1272_v8 }
 0x46d PF: > { %p1697_p4 = scmp.ge.s32.totalorder %s1853_s22, 2  ;;  %s1390_s27 = sand.u32 1, %s1833_s17  }
 0x46e   : > { %s1391_s15 = scalar_lea.sflag [#allocation3], %s1390_s27 }
 0x46f   : > { %p1694_p2 = pnand %p1697_p4, %p1970_p8 }
 0x471   : > { %1828 = dma.done.wait (!%p1694_p2), %s1391_s15, 128  }
 0x472   : > { %1830 = vsyncadd (!%p1694_p2), %s1391_s15, 4294967168  ;;  %s25_s22 = sadd.s32 1, %s1853_s22   ;;  %s2225_s28 = sld [smem:[#allocation7_spill]] }
 0x473   : > { %p22_p3 = scmp.ge.s32.totalorder %s25_s22, 4   ;;  %s2226_s20 = sld [smem:[#allocation5_spill]] }
 0x474   : > { %s2227_s21 = sld [smem:[#allocation6_spill]]  ;;  %s2228_s17 = smov %s1837_s18 }
 0x475   : > { %s2229_s18 = smov %s1841_s19  ;;  %24 = sbr.rel (!%p22_p3) target bundleno = 6 (0x6), region = 114 }
 0x478   : > { %s2230_s19 = smov %s2225_s28 }
 0x47c   :  { %1396 = vsyncpa [#allocation3], 1 }
 0x47d   :  { %1398 = vsyncpa [#allocation3 + $0x1], 1 }

</bundles_post_ra>
